<compile_context>
chip_gen: v7x
topology: tpu7x:2x2x1
jax: 0.10.0
libtpu: 0.0.40
codegen_flags: <defaults>
</compile_context>

<pallas_src>
import functools

import jax
import jax.numpy as jnp
from jax import lax
from jax.experimental import pallas as pl
from jax.experimental.pallas import tpu as pltpu

_LANE = 128        # vreg lane width
_SUBLANE = 8       # f32 sublane count
_TILE_CAP = 2048   # max batch rows per grid step (~400 KiB double-buffered VMEM)


def _round_up(x, m):
    return (x + m - 1) // m * m


def _cdiv(a, b):
    return (a + b - 1) // b


def _choose_batch_tile(b):
    """Pick the batch tile: lane-aligned, capped, >=2 grid steps when possible."""
    b8 = _round_up(b, _SUBLANE)
    if b8 <= _LANE:
        # Tiny batch: one small tile (masked stores, irrelevant at this size).
        tile_b = b8
    elif b8 <= 2 * _TILE_CAP:
        # Split into exactly 2 lane-aligned tiles so v7x's two TensorCores both work.
        tile_b = _round_up(_cdiv(b8, 2), _LANE)
    else:
        tile_b = _TILE_CAP
    return tile_b, _cdiv(b, tile_b)


def _calibrated_matmul_kernel(scale_ref, x_ref, w_ref, o_ref):
    # scale_ref: SMEM (1,) f32          -- additive calibration bias (the `scale` param)
    # x_ref:     VMEM (tile_b, H)       -- activation tile (bf16 on the hot path)
    # w_ref:     VMEM (C_pad8, H)       -- folded weight, 1/temperature already applied
    # o_ref:     VMEM (C_pad8, tile_b)  -- TRANSPOSED logits block (batch on lanes)
    acc = lax.dot_general(
        w_ref[...], x_ref[...],
        dimension_numbers=(((1,), (1,)), ((), ())),   # contract H on both => W @ x^T
        preferred_element_type=jnp.float32)
    o_ref[...] = (acc + scale_ref[0]).astype(o_ref.dtype)


def fold_calibration_params(w_model, w_g0, w_g1, temperature,
                            dtype=jnp.bfloat16):
    """One-time folding of the linear chain + temperature (hoisted off the hot path).

    Args (PyTorch (out, in) layout):
      w_model: (C, H)   inner model Linear weight
      w_g0:    (G, C)   g_layer[0] weight
      w_g1:    (C, G)   g_layer[1] weight
      temperature: scalar
      dtype: storage dtype for the folded weight (bf16 halves HBM/VMEM traffic).

    Returns:
      (w_eff, out_size): (C_pad8, H) folded weight (sublane-padded rows), and the
      true output width C.
    """
    w_model = jnp.asarray(w_model, jnp.float32)   # (C, H)
    w_g0 = jnp.asarray(w_g0, jnp.float32)         # (G, C)
    w_g1 = jnp.asarray(w_g1, jnp.float32)         # (C, G)

    # x @ Wm^T @ Wg0^T @ Wg1^T / T  ==  [(Wg1 @ Wg0 @ Wm) / T] @ x^T  (transposed out)
    w_chain = w_g1 @ (w_g0 @ w_model)                      # (C, H), folded in f32
    w_eff = w_chain / jnp.float32(temperature)             # (C, H)

    c, h = w_eff.shape
    c_pad = _round_up(c, _SUBLANE)
    w_pad = jnp.zeros((c_pad, h), jnp.float32).at[:c, :].set(w_eff)
    return w_pad.astype(dtype), int(c)


@functools.partial(jax.jit, static_argnames=("out_size", "return_transposed_padded"))
def calibrated_forward(x, w_eff, scale, *, out_size, return_transposed_padded=False):
    """Fused forward: inner linear -> g_layer -> temperature scaling, one matmul.

    x:      (B, H) activations; feed bf16 on the hot path for bandwidth.
    w_eff:  (C_pad8, H) folded weight from fold_calibration_params.
    scale:  scalar calibration bias.
    Returns (B, C) logits (PyTorch layout), or the raw (C_pad8, B_pad) transposed
    slab if return_transposed_padded=True (lets a fused consumer skip the copy).
    """
    b, h = x.shape
    c_pad, h_w = w_eff.shape
    assert h_w == h, "hidden dim mismatch between x and folded weight"
    w_eff = w_eff.astype(x.dtype)   # tiny (8 x H); no-op when dtypes already match

    tile_b, num_tiles = _choose_batch_tile(b)
    b_out = num_tiles * tile_b      # output batch extent (padded; padded cols unused)
    scale_arr = jnp.asarray(scale, jnp.float32).reshape((1,))

    out_t = pl.pallas_call(
        _calibrated_matmul_kernel,
        out_shape=jax.ShapeDtypeStruct((c_pad, b_out), jnp.float32),
        grid=(num_tiles,),
        in_specs=[
            # scalar calibration bias in SMEM (whole (1,) array every tile)
            pl.BlockSpec((1,), lambda i: (0,),
                         memory_space=pltpu.MemorySpace.SMEM),
            # activations: one batch tile per grid step (last block may be ragged;
            # OOB rows only feed padded output columns, never read back)
            pl.BlockSpec((tile_b, h), lambda i: (i, 0)),
            # folded weight: full tiny block, replicated to every tile / both cores
            pl.BlockSpec((c_pad, h), lambda i: (0, 0)),
        ],
        # transposed output: batch on the lane axis -> lane-dense stores, tiny writes
        out_specs=pl.BlockSpec((c_pad, tile_b), lambda i: (0, i)),
        compiler_params=pltpu.CompilerParams(
            dimension_semantics=("parallel",)),   # megacore batch split on v7x
    )(scale_arr, x, w_eff)

    if return_transposed_padded:
        return out_t
    # Tiny (8, B) -> (B, C) slice+transpose; negligible vs the kernel's HBM traffic.
    return out_t[:out_size, :b].T


def _reference(x, w_model, w_g0, w_g1, temperature, scale):
    logits = x @ w_model.T          # inner model (Linear, no bias)
    logits = logits @ w_g0.T        # g_layer[0]
    logits = logits @ w_g1.T        # g_layer[1]
    return logits / temperature + scale


if __name__ == "__main__":
    # Small shapes consistent with the module: out_size=2, g_layer hidden=100.
    H, C, G = 32, 2, 100

    key = jax.random.PRNGKey(0)
    k_x, k_wm, k_w0, k_w1 = jax.random.split(key, 4)

    # Deterministic synthetic weights (PyTorch (out, in) convention).
    w_model = jax.random.normal(k_wm, (C, H), dtype=jnp.float32) * (1.0 / jnp.sqrt(H))
    w_g0 = jax.random.normal(k_w0, (G, C), dtype=jnp.float32) * (1.0 / jnp.sqrt(C))
    w_g1 = jax.random.normal(k_w1, (C, G), dtype=jnp.float32) * (1.0 / jnp.sqrt(G))

    temperature = 1.01   # nn.Parameter(torch.ones(1) * 1.01)
    scale = 0.01         # nn.Parameter(torch.ones(1) * 0.01)

    # One-time fold (done once at load time in a real deployment).
    w_eff, out_size = fold_calibration_params(w_model, w_g0, w_g1, temperature)
    w_eff = jax.block_until_ready(w_eff)

    def run_and_check(b):
        x_f32 = jax.random.normal(jax.random.fold_in(k_x, b), (b, H), jnp.float32)
        x = x_f32.astype(jnp.bfloat16)     # bf16 activations on the hot path
        out = jax.block_until_ready(
            calibrated_forward(x, w_eff, scale, out_size=out_size))
        assert out.shape == (b, C)
        # (a) tight check vs a reference with identical input quantization
        ref_q = (x.astype(jnp.float32) @ w_eff.astype(jnp.float32).T)[:, :C] + scale
        assert jnp.allclose(out, ref_q, atol=1e-4, rtol=1e-4), "kernel vs folded ref"
        # (b) semantic check vs the exact f32 sequential chain (bf16 inputs => loose tol)
        ref = _reference(x_f32, w_model, w_g0, w_g1, temperature, scale)
        assert jnp.allclose(out, ref, atol=5e-2, rtol=5e-2), "kernel vs f32 reference"

    run_and_check(8)     # module-scale batch: single small tile
    run_and_check(300)   # multi-tile path: two 256-row tiles (megacore) + ragged tail

    print("KERNEL_OK")
</pallas_src>

<mosaic_0001>
module attributes {stable_mosaic.version = 11 : i64} {
  func.func @_calibrated_matmul_kernel(%arg0: i32, %arg1: memref<1xf32, #tpu.memory_space<smem>>, %arg2: memref<8x32xbf16, #tpu.memory_space<vmem>>, %arg3: memref<8x32xbf16, #tpu.memory_space<vmem>>, %arg4: memref<8x8xf32, #tpu.memory_space<vmem>>) attributes {dimension_semantics = [#tpu.dimension_semantics<parallel>], iteration_bounds = array<i64: 1>, scalar_prefetch = 0 : i64, scratch_operands = 0 : i64, tpu.core_type = #tpu.core_type<tc>, window_params = [{transform_indices = @transform_0, window_bounds = array<i64: 1>}, {transform_indices = @transform_1, window_bounds = array<i64: 8, 32>}, {pipeline_mode = #tpu.pipeline_mode<synchronous>, transform_indices = @transform_2, window_bounds = array<i64: 8, 32>}, {transform_indices = @transform_3, window_bounds = array<i64: 8, 8>}]} {
    %c0 = arith.constant 0 : index
    %c0_0 = arith.constant 0 : index
    %0 = vector.load %arg3[%c0, %c0_0] : memref<8x32xbf16, #tpu.memory_space<vmem>>, vector<8x32xbf16>
    %c0_1 = arith.constant 0 : index
    %c0_2 = arith.constant 0 : index
    %1 = vector.load %arg2[%c0_1, %c0_2] : memref<8x32xbf16, #tpu.memory_space<vmem>>, vector<8x32xbf16>
    %cst = arith.constant dense<0.000000e+00> : vector<8x8xf32>
    %2 = tpu.matmul %0, %1, %cst {dimension_numbers = #tpu.dot_dimension_numbers<[1], [1], [0], [0], [0, 0, 1, 0], [], []>} : vector<8x32xbf16>, vector<8x32xbf16>, vector<8x8xf32> -> vector<8x8xf32>
    %c0_3 = arith.constant 0 : index
    %3 = memref.load %arg1[%c0_3] : memref<1xf32, #tpu.memory_space<smem>>
    %4 = vector.broadcast %3 : f32 to vector<8x8xf32>
    %5 = arith.addf %2, %4 : vector<8x8xf32>
    %c0_4 = arith.constant 0 : index
    %c0_5 = arith.constant 0 : index
    %6 = vector.load %arg4[%c0_4, %c0_5] : memref<8x8xf32, #tpu.memory_space<vmem>>, vector<8x8xf32>
    tpu.vector_store %arg4[%c0_4, %c0_5], %5 {strides = array<i32>} : memref<8x8xf32, #tpu.memory_space<vmem>>, vector<8x8xf32>,
    return
  }
  func.func @transform_0(%arg0: i32) -> i32 {
    %c0_i32 = arith.constant 0 : i32
    %c0_i32_0 = arith.constant 0 : i32
    return %c0_i32 : i32
  }
  func.func @transform_1(%arg0: i32) -> (i32, i32) {
    %c0_i32 = arith.constant 0 : i32
    %c0_i32_0 = arith.constant 0 : i32
    return %arg0, %c0_i32 : i32, i32
  }
  func.func @transform_2(%arg0: i32) -> (i32, i32) {
    %c0_i32 = arith.constant 0 : i32
    %c0_i32_0 = arith.constant 0 : i32
    %c0_i32_1 = arith.constant 0 : i32
    return %c0_i32, %c0_i32_0 : i32, i32
  }
  func.func @transform_3(%arg0: i32) -> (i32, i32) {
    %c0_i32 = arith.constant 0 : i32
    %c0_i32_0 = arith.constant 0 : i32
    return %c0_i32, %arg0 : i32, i32
  }
}

</mosaic_0001>

<bundles_post_ra>
// kernel: calibrated_forward.1
= control target key start
LH: loop header
LB: loop body
LE: loop exit
PB: predicated region body
PF: predicated region fallthrough
CT: control target
= control target key end

     0   :  { %vm20_vm0 = vcmask 261120   ;;  %v84_v0 = vmov 0.0   ;;  %vm85_vm1 = vmmov 0   ;;  %vm67_vm2 = vcmask 64512   ;;  %s118_s1 = inlined_call_operand.vmem [shape: bf16[8,32], index: 1, kind: input, shape index: {}]   ;;  %s119_s2 = inlined_call_operand.vmem [shape: bf16[8,32], index: 2, kind: input, shape index: {}]   ;;  %s120_s0 = inlined_call_operand.<no memory space> [shape: f32[1], index: 0, kind: input, shape index: {}]   ;;  %s121_s3 = inlined_call_operand.vmem [shape: f32[8,8], index: 3, kind: output, shape index: {}]  }
   0x1   :  { %76 = vmatprep.subr.bf16.mxu0 %v84_v0  ;;  %v17_v1 = vld [vmem:[%s118_s1] sm:$0xf]  ;;  %78 = vmatprep.mubr.msk.bf16.mxu0 %vm85_vm1, %v84_v0  ;;  %v19_v4 = vstv %s120_s0 }
   0x2   :  { %v25_v2 = vsel %vm20_vm0, %v17_v1, 0  ;;  %v16_v3 = vld [vmem:[%s119_s2] sm:$0xf] }
   0x3   :  { %77 = vmatpush3.bf16.xpose.msra.mxu0 %v25_v2 }
   0xa   :  { %79 = vmatmul.mubr.msk.bf16.vlgmr.msra.gmra.mrb[0].mxu0 %vm20_vm0, %v16_v3 }
  0xdd   :  { %v61_v5 = vpop.f32.mrb[0].mxu0 }
  0xde   :  { %v62_v6 = vadd.f32 %v61_v5, %v19_v4  ;;  %v80_v7 = vpop.f32.mrb[1].mxu0 }
  0xdf   :  { %v64_v8 = vpop.f32.mrb[2].mxu0 }
  0xe0   :  { %68 = vst.msk [vmem:[%s121_s3] sm:$0xff] %vm67_vm2, %v62_v6  ;;  %v81_v9 = vpop.f32.mrb[3].mxu0 }

</bundles_post_ra>
